<compile_context>
chip_gen: v6e
topology: v6e:2x2x1
jax: 0.10.0
libtpu: 0.0.40
codegen_flags: <defaults>
</compile_context>

<pallas_src>
import math

import jax
import jax.numpy as jnp
from jax.experimental import pallas as pl
from jax.experimental.pallas import tpu as pltpu

OUT_PAD = 128  # lane-dense output slab width


def _build_kernel(TB, Lp, L, kernel_sizes, num_channels):
    kmax = max(kernel_sizes)
    P = TB * Lp - kmax + 1  # rows of the im2col slab (all TB batch rows folded into M)

    def kernel(emb_ref, wconv_ref, bconv_ref, wfc_ref, bfc_ref, out_ref):
        xf = emb_ref[...]                                       # (TB*Lp, D) bf16
        # im2col: kmax shifted copies concatenated on the lane axis -> (P, kmax*D)
        xu = jnp.concatenate([xf[j:j + P, :] for j in range(kmax)], axis=-1)
        # One fused MXU matmul for all taps, all branches, all batch rows.
        acc = jnp.dot(xu, wconv_ref[...],
                      preferred_element_type=jnp.float32)       # (P, sumC) f32
        # AdaptiveMaxPool1d(1): per (batch row, branch) max over that branch's valid
        # positions.  Taps j >= k_i have zero weight in the fused matrix, so positions
        # beyond each branch's valid range are simply never read here.
        rows = []
        for b in range(TB):
            cols = []
            off = 0
            for k, C in zip(kernel_sizes, num_channels):
                T = L - k + 1
                cols.append(jnp.max(acc[b * Lp:b * Lp + T, off:off + C],
                                    axis=0, keepdims=True))     # (1, C)
                off += C
            rows.append(cols[0] if len(cols) == 1 else jnp.concatenate(cols, axis=-1))
        feat = rows[0] if TB == 1 else jnp.concatenate(rows, axis=0)  # (TB, sumC) f32
        # Bias + ReLU hoisted from (T, C) to the pooled features (bias constant over
        # time, ReLU monotone -> mathematically identical).
        feat = jnp.maximum(feat + bconv_ref[...], 0.0)
        # fc_specific, lane-dense 128-wide padded output slab.
        out_ref[...] = (jnp.dot(feat, wfc_ref[...], preferred_element_type=jnp.float32)
                        + bfc_ref[...]).astype(out_ref.dtype)

    return kernel


def generate_forward(emb, conv_ws, conv_bs, wfc, bfc):
    """emb: (B, L, D) float32. conv_ws[i]: (k_i, D, C_i). wfc: (sumC, out).
    Returns [target (B, out), None, None]."""
    B, L, D = emb.shape
    kernel_sizes = [int(w.shape[0]) for w in conv_ws]
    num_channels = [int(w.shape[2]) for w in conv_ws]
    out_size = int(wfc.shape[1])
    sumC = sum(num_channels)
    kmax, kmin = max(kernel_sizes), min(kernel_sizes)

    # Batch blocking: whole batch in one grid step when small; 8-row blocks otherwise.
    TB = B if B <= 8 else 8
    gB = -(-B // TB)
    B_pad = gB * TB
    Lp = L + (kmax - kmin)  # separator/pad rows so every shifted slab stays in-bounds

    # ---- wrapper-side layout plumbing (no compute hoisted out of the kernel) ----
    # emb / conv weights in bf16 (halves HBM bytes, native MXU rate on v6e/v7x);
    # all accumulation and the epilogue stay in f32 inside the kernel.
    emb_bf = emb.astype(jnp.bfloat16)
    emb_pad = jnp.pad(emb_bf, ((0, B_pad - B), (0, Lp - L), (0, 0)))
    emb_flat = emb_pad.reshape(B_pad * Lp, D)  # batch folded into the matmul M dimension

    # Fused conv weight: each branch (k_i, D, C_i) zero-padded to kmax taps, concatenated
    # on the channel axis -> (kmax*D, sumC).
    cols = []
    for w in conv_ws:
        k, _, C = w.shape
        w_b = w.astype(jnp.bfloat16)
        if k < kmax:
            w_b = jnp.concatenate(
                [w_b, jnp.zeros((kmax - k, D, C), jnp.bfloat16)], axis=0)
        cols.append(w_b)
    wconv = jnp.concatenate(cols, axis=2).reshape(kmax * D, sumC)
    bconv = jnp.concatenate([b.reshape(1, -1) for b in conv_bs],
                            axis=1).astype(jnp.float32)          # (1, sumC)

    # fc stays in f32 (tiny); pad its output dim to a 128-lane-dense slab.
    wfc_pad = jnp.zeros((sumC, OUT_PAD), jnp.float32).at[:, :out_size].set(wfc)
    bfc_pad = jnp.zeros((1, OUT_PAD), jnp.float32).at[:, :out_size].set(bfc.reshape(1, -1))

    kernel = _build_kernel(TB, Lp, L, kernel_sizes, num_channels)
    rows_per_block = TB * Lp

    out = pl.pallas_call(
        kernel,
        out_shape=jax.ShapeDtypeStruct((B_pad, OUT_PAD), jnp.float32),
        grid=(gB,),
        in_specs=[
            pl.BlockSpec((rows_per_block, D), lambda g: (g, 0)),
            pl.BlockSpec(wconv.shape, lambda g: (0, 0)),       # grid-invariant weights
            pl.BlockSpec(bconv.shape, lambda g: (0, 0)),
            pl.BlockSpec(wfc_pad.shape, lambda g: (0, 0)),
            pl.BlockSpec(bfc_pad.shape, lambda g: (0, 0)),
        ],
        out_specs=pl.BlockSpec((TB, OUT_PAD), lambda g: (g, 0)),
        compiler_params=pltpu.CompilerParams(
            dimension_semantics=("parallel",)),  # independent batch blocks (v7x: 2 TCs)
    )(emb_flat, wconv, bconv, wfc_pad, bfc_pad)

    target = out[:B, :out_size]
    return [target, None, None]


def reference(emb, conv_ws, conv_bs, wfc, bfc):
    """Pure-JAX reference matching the PyTorch forward.  Mirrors the kernel's one-time
    bf16 rounding of emb / conv weights; all math in f32 at HIGHEST precision."""
    hp = jax.lax.Precision.HIGHEST
    emb = emb.astype(jnp.bfloat16).astype(jnp.float32)
    B, L, D = emb.shape
    feats = []
    for w_f32, b in zip(conv_ws, conv_bs):
        w = w_f32.astype(jnp.bfloat16).astype(jnp.float32)       # (k, D, C)
        k, _, C = w.shape
        T = L - k + 1
        acc = jnp.zeros((B, T, C), jnp.float32)
        for j in range(k):
            acc = acc + jnp.einsum('btd,dc->btc', emb[:, j:j + T, :], w[j], precision=hp)
        acc = jax.nn.relu(acc + b.reshape(1, 1, -1))             # bias + ReLU (per-timestep)
        feats.append(jnp.max(acc, axis=1))                       # AdaptiveMaxPool1d(1)
    specific = jnp.concatenate(feats, axis=1)
    return jnp.dot(specific, wfc, precision=hp) + bfc.reshape(1, -1)


if __name__ == "__main__":
    # Small config implied by the module's __init__ (args)
    B, L = 2, 16                 # batch, sequence length
    bert_dim = 32                # args.bert_dim
    num_channels = [8, 8]        # args.num_channels
    kernel_sizes = [3, 4]        # args.kernel_sizes
    output_size = 8              # args.output_size
    vocab = 100
    # args.bidirectional = True -> fc_specific: Linear(sum(num_channels), output_size)

    key = jax.random.PRNGKey(0)
    keys = jax.random.split(key, 10)

    # TODO(synk): real pretrained BERT tokenizer/model (frozen) replaced by a
    # deterministic synthetic token-embedding table; kernel consumes (B, L, D).
    emb_table = jax.random.normal(keys[0], (vocab, bert_dim), jnp.float32) * 0.02
    token_ids = jax.random.randint(keys[1], (B, L), 0, vocab)
    emb = emb_table[token_ids].astype(jnp.float32)               # plain-JAX glue (B, L, D)

    # Conv1d weights: kaiming_normal_ (PyTorch layout (C, D, k)) transposed to (k, D, C).
    # PyTorch init zeroes the conv biases (uniform_(0, 0)); small nonzero values are used
    # here so the test also guards the hoisted bias+ReLU path in the kernel.
    conv_ws, conv_bs = [], []
    for i, (C, k) in enumerate(zip(num_channels, kernel_sizes)):
        std = math.sqrt(2.0 / (bert_dim * k))
        w_torch = jax.random.normal(keys[2 + i], (C, bert_dim, k), jnp.float32) * std
        conv_ws.append(jnp.transpose(w_torch, (2, 1, 0)))        # (k, D, C)
        conv_bs.append(0.01 * jax.random.normal(keys[4 + i], (1, C), jnp.float32))

    # fc_specific: xavier_normal_ weight, default-init bias
    sumC = sum(num_channels)
    std = math.sqrt(2.0 / (sumC + output_size))
    wfc_torch = jax.random.normal(keys[6], (output_size, sumC), jnp.float32) * std
    wfc = wfc_torch.T                                            # (sumC, out)
    bound = 1.0 / math.sqrt(sumC)
    bfc = jax.random.uniform(keys[7], (1, output_size), jnp.float32,
                             minval=-bound, maxval=bound)

    result = generate_forward(emb, conv_ws, conv_bs, wfc, bfc)
    target = jax.block_until_ready(result[0])

    ref = reference(emb, conv_ws, conv_bs, wfc, bfc)
    assert target.shape == (B, output_size)
    assert jnp.allclose(target, ref, atol=1e-5, rtol=1e-5), (
        f"mismatch: max abs err {jnp.max(jnp.abs(target - ref))}")
    print("KERNEL_OK")
</pallas_src>

<mosaic_0001>
module attributes {stable_mosaic.version = 11 : i64} {
  func.func @kernel(%arg0: i32, %arg1: memref<34x32xbf16, #tpu.memory_space<vmem>>, %arg2: memref<128x16xbf16, #tpu.memory_space<vmem>>, %arg3: memref<1x16xf32, #tpu.memory_space<vmem>>, %arg4: memref<16x128xf32, #tpu.memory_space<vmem>>, %arg5: memref<1x128xf32, #tpu.memory_space<vmem>>, %arg6: memref<2x128xf32, #tpu.memory_space<vmem>>) attributes {dimension_semantics = [#tpu.dimension_semantics<parallel>], iteration_bounds = array<i64: 1>, scalar_prefetch = 0 : i64, scratch_operands = 0 : i64, tpu.core_type = #tpu.core_type<tc>, window_params = [{transform_indices = @transform_0, window_bounds = array<i64: 34, 32>}, {pipeline_mode = #tpu.pipeline_mode<synchronous>, transform_indices = @transform_1, window_bounds = array<i64: 128, 16>}, {pipeline_mode = #tpu.pipeline_mode<synchronous>, transform_indices = @transform_2, window_bounds = array<i64: 1, 16>}, {pipeline_mode = #tpu.pipeline_mode<synchronous>, transform_indices = @transform_3, window_bounds = array<i64: 16, 128>}, {pipeline_mode = #tpu.pipeline_mode<synchronous>, transform_indices = @transform_4, window_bounds = array<i64: 1, 128>}, {transform_indices = @transform_5, window_bounds = array<i64: 2, 128>}]} {
    %c0 = arith.constant 0 : index
    %c0_0 = arith.constant 0 : index
    %0 = vector.load %arg1[%c0, %c0_0] : memref<34x32xbf16, #tpu.memory_space<vmem>>, vector<34x32xbf16>
    %1 = vector.extract_strided_slice %0 {offsets = [0, 0], sizes = [31, 32], strides = [1, 1]} : vector<34x32xbf16> to vector<31x32xbf16>
    %2 = vector.extract_strided_slice %0 {offsets = [1, 0], sizes = [31, 32], strides = [1, 1]} : vector<34x32xbf16> to vector<31x32xbf16>
    %3 = vector.extract_strided_slice %0 {offsets = [2, 0], sizes = [31, 32], strides = [1, 1]} : vector<34x32xbf16> to vector<31x32xbf16>
    %4 = vector.extract_strided_slice %0 {offsets = [3, 0], sizes = [31, 32], strides = [1, 1]} : vector<34x32xbf16> to vector<31x32xbf16>
    %5 = tpu.concatenate %1, %2, %3, %4 in 1 : vector<31x32xbf16>, vector<31x32xbf16>, vector<31x32xbf16>, vector<31x32xbf16> -> vector<31x128xbf16>
    %c0_1 = arith.constant 0 : index
    %c0_2 = arith.constant 0 : index
    %6 = vector.load %arg2[%c0_1, %c0_2] : memref<128x16xbf16, #tpu.memory_space<vmem>>, vector<128x16xbf16>
    %cst = arith.constant dense<0.000000e+00> : vector<31x16xf32>
    %7 = tpu.matmul %5, %6, %cst {dimension_numbers = #tpu.dot_dimension_numbers<[1], [0], [0], [1], [0, 0, 1, 1], [], []>} : vector<31x128xbf16>, vector<128x16xbf16>, vector<31x16xf32> -> vector<31x16xf32>
    %8 = vector.extract_strided_slice %7 {offsets = [0, 0], sizes = [14, 8], strides = [1, 1]} : vector<31x16xf32> to vector<14x8xf32>
    %cst_3 = arith.constant dense<0xFF800000> : vector<8xf32>
    %9 = vector.multi_reduction <maximumf>, %8, %cst_3 [0] : vector<14x8xf32> to vector<8xf32>
    %10 = vector.shape_cast %9 : vector<8xf32> to vector<1x8xf32>
    %11 = vector.extract_strided_slice %7 {offsets = [0, 8], sizes = [13, 8], strides = [1, 1]} : vector<31x16xf32> to vector<13x8xf32>
    %cst_4 = arith.constant dense<0xFF800000> : vector<8xf32>
    %12 = vector.multi_reduction <maximumf>, %11, %cst_4 [0] : vector<13x8xf32> to vector<8xf32>
    %13 = vector.shape_cast %12 : vector<8xf32> to vector<1x8xf32>
    %14 = tpu.concatenate %10, %13 in 1 : vector<1x8xf32>, vector<1x8xf32> -> vector<1x16xf32>
    %15 = vector.extract_strided_slice %7 {offsets = [17, 0], sizes = [14, 8], strides = [1, 1]} : vector<31x16xf32> to vector<14x8xf32>
    %cst_5 = arith.constant dense<0xFF800000> : vector<8xf32>
    %16 = vector.multi_reduction <maximumf>, %15, %cst_5 [0] : vector<14x8xf32> to vector<8xf32>
    %17 = vector.shape_cast %16 : vector<8xf32> to vector<1x8xf32>
    %18 = vector.extract_strided_slice %7 {offsets = [17, 8], sizes = [13, 8], strides = [1, 1]} : vector<31x16xf32> to vector<13x8xf32>
    %cst_6 = arith.constant dense<0xFF800000> : vector<8xf32>
    %19 = vector.multi_reduction <maximumf>, %18, %cst_6 [0] : vector<13x8xf32> to vector<8xf32>
    %20 = vector.shape_cast %19 : vector<8xf32> to vector<1x8xf32>
    %21 = tpu.concatenate %17, %20 in 1 : vector<1x8xf32>, vector<1x8xf32> -> vector<1x16xf32>
    %22 = tpu.concatenate %14, %21 in 0 : vector<1x16xf32>, vector<1x16xf32> -> vector<2x16xf32>
    %c0_7 = arith.constant 0 : index
    %c0_8 = arith.constant 0 : index
    %23 = vector.load %arg3[%c0_7, %c0_8] : memref<1x16xf32, #tpu.memory_space<vmem>>, vector<1x16xf32>
    %24 = vector.broadcast %23 : vector<1x16xf32> to vector<2x16xf32>
    %25 = arith.addf %22, %24 : vector<2x16xf32>
    %cst_9 = arith.constant 0.000000e+00 : f32
    %26 = vector.broadcast %cst_9 : f32 to vector<2x16xf32>
    %27 = arith.maximumf %25, %26 : vector<2x16xf32>
    %c0_10 = arith.constant 0 : index
    %c0_11 = arith.constant 0 : index
    %28 = vector.load %arg4[%c0_10, %c0_11] : memref<16x128xf32, #tpu.memory_space<vmem>>, vector<16x128xf32>
    %cst_12 = arith.constant dense<0.000000e+00> : vector<2x128xf32>
    %29 = tpu.matmul %27, %28, %cst_12 {dimension_numbers = #tpu.dot_dimension_numbers<[1], [0], [0], [1], [0, 0, 1, 1], [], []>} : vector<2x16xf32>, vector<16x128xf32>, vector<2x128xf32> -> vector<2x128xf32>
    %c0_13 = arith.constant 0 : index
    %c0_14 = arith.constant 0 : index
    %30 = vector.load %arg5[%c0_13, %c0_14] : memref<1x128xf32, #tpu.memory_space<vmem>>, vector<1x128xf32>
    %31 = vector.broadcast %30 : vector<1x128xf32> to vector<2x128xf32>
    %32 = arith.addf %29, %31 : vector<2x128xf32>
    %c0_15 = arith.constant 0 : index
    %c0_16 = arith.constant 0 : index
    %33 = vector.load %arg6[%c0_15, %c0_16] : memref<2x128xf32, #tpu.memory_space<vmem>>, vector<2x128xf32>
    tpu.vector_store %arg6[%c0_15, %c0_16], %32 {strides = array<i32>} : memref<2x128xf32, #tpu.memory_space<vmem>>, vector<2x128xf32>,
    return
  }
  func.func @transform_0(%arg0: i32) -> (i32, i32) {
    %c0_i32 = arith.constant 0 : i32
    %c0_i32_0 = arith.constant 0 : i32
    return %arg0, %c0_i32 : i32, i32
  }
  func.func @transform_1(%arg0: i32) -> (i32, i32) {
    %c0_i32 = arith.constant 0 : i32
    %c0_i32_0 = arith.constant 0 : i32
    %c0_i32_1 = arith.constant 0 : i32
    return %c0_i32, %c0_i32_0 : i32, i32
  }
  func.func @transform_2(%arg0: i32) -> (i32, i32) {
    %c0_i32 = arith.constant 0 : i32
    %c0_i32_0 = arith.constant 0 : i32
    %c0_i32_1 = arith.constant 0 : i32
    return %c0_i32, %c0_i32_0 : i32, i32
  }
  func.func @transform_3(%arg0: i32) -> (i32, i32) {
    %c0_i32 = arith.constant 0 : i32
    %c0_i32_0 = arith.constant 0 : i32
    %c0_i32_1 = arith.constant 0 : i32
    return %c0_i32, %c0_i32_0 : i32, i32
  }
  func.func @transform_4(%arg0: i32) -> (i32, i32) {
    %c0_i32 = arith.constant 0 : i32
    %c0_i32_0 = arith.constant 0 : i32
    %c0_i32_1 = arith.constant 0 : i32
    return %c0_i32, %c0_i32_0 : i32, i32
  }
  func.func @transform_5(%arg0: i32) -> (i32, i32) {
    %c0_i32 = arith.constant 0 : i32
    %c0_i32_0 = arith.constant 0 : i32
    return %arg0, %c0_i32 : i32, i32
  }
}

</mosaic_0001>

<bundles_post_ra>
// kernel: tpu_custom_call.1
= control target key start
LH: loop header
LB: loop body
LE: loop exit
PB: predicated region body
PF: predicated region fallthrough
CT: control target
= control target key end

     0   :  { %vm60_vm0 = vcmask 1046528   ;;  %vm37_vm1 = vsmask.f32 7424  ;;  %s472_s27 = smov 64   ;;  %s473_s30 = smov 32   ;;  %s574_s0 = inlined_call_operand.vmem [shape: bf16[34,32], index: 0, kind: input, shape index: {}]   ;;  %s575_s1 = inlined_call_operand.vmem [shape: bf16[128,16], index: 1, kind: input, shape index: {}]   ;;  %s576_s2 = inlined_call_operand.vmem [shape: f32[1,16], index: 2, kind: input, shape index: {}]   ;;  %s577_s3 = inlined_call_operand.vmem [shape: f32[16,128], index: 3, kind: input, shape index: {}]   ;;  %s578_s4 = inlined_call_operand.vmem [shape: f32[1,128], index: 4, kind: input, shape index: {}]   ;;  %s579_s5 = inlined_call_operand.hbm [shape: f32[2,128], index: 5, kind: output, shape index: {}]  }
   0x1   :  { %v511_v0 = vld [vmem:[%s574_s0] sm:$0xff]   ;;  %v516_v1 = vld [vmem:[%s574_s0 + $0x8] sm:$0xff]   ;;  %v441_v2 = vld [vmem:[%s574_s0 + $0x10] ss:$0 sps:$4 sm:$0x11]   ;;  %s474_s8 = smov 96  }
   0x2   :  { %v61_v3 = vrot.slane %v511_v0, 1  ;;  %v62_v4 = vrot.slane %v516_v1, 1  ;;  %v46_v5 = vshll.u32 %v516_v1, 16  ;;  %v50_v6 = vshrl.u32 %v516_v1, 16  ;;  %v442_v7 = vld [vmem:[%s575_s1 + $0x38] sm:$0xff]   ;;  %v443_v11 = vld [vmem:[%s575_s1 + $0x30] sm:$0xff]  }
   0x3   :  { %v64_v8 = vrot.slane %v441_v2, 1  ;;  %v39_v9 = vshrl.u32 %v511_v0, 16  ;;  %v41_v10 = vshll.u32 %v511_v0, 16  ;;  %406 = vmatprep.subr.bf16.mxu0 %v442_v7  ;;  %v79_v17 = vshrl.u32 %v441_v2, 16  ;;  %v444_v18 = vld [vmem:[%s575_s1 + $0x28] sm:$0xff]   ;;  %v445_v31 = vld [vmem:[%s575_s1 + $0x20] sm:$0xff]  }
   0x4   :  { %v63_v12 = vsel %vm60_vm0, %v61_v3, %v62_v4  ;;  %v48_v13 = vrot.slane %v46_v5, 1  ;;  %v74_v14 = vrot.slane %v50_v6, 1  ;;  %v75_v15 = vrot.slane %v46_v5, 2  ;;  %407 = vmatpush3.bf16.msra.mxu0 %v442_v7 }
   0x5   :  { %66 = vrot.lane.b32.xlu1 %v63_v12, %s472_s27  ;;  %v43_v16 = vrot.slane %v41_v10, 1  ;;  %v65_v20 = vsel %vm60_vm0, %v62_v4, %v64_v8  ;;  %v82_v21 = vshll.u32 %v441_v2, 16  ;;  %v71_v22 = vrot.slane %v39_v9, 1  ;;  %408 = vmatprep.subr.bf16.mxu0 %v443_v11 }
   0x6   :  { %v52_v19 = vor.u32 %v50_v6, %v48_v13  ;;  %v81_v24 = vrot.slane %v79_v17, 1  ;;  %v72_v25 = vrot.slane %v41_v10, 2  ;;  %v76_v26 = vor.u32 %v75_v15, %v74_v14 }
   0x7   :  { %v44_v23 = vor.u32 %v43_v16, %v39_v9  ;;  %v84_v27 = vrot.slane %v82_v21, 2  ;;  %vm70_vm2 = vsmask.f32 6400 }
   0x8   :  { %55 = vrot.lane.b32.xlu0 %v52_v19, %s473_s30  ;;  %v73_v29 = vor.u32 %v72_v25, %v71_v22  ;;  %409 = vmatpush3.bf16.msra.mxu0 %v443_v11 }
   0x9   :  { %68 = vrot.lane.b32.xlu1 %v65_v20, %s472_s27  ;;  %v49_v28 = vsel %vm37_vm1, %v44_v23, %v48_v13  ;;  %v85_v30 = vor.u32 %v84_v27, %v81_v24  ;;  %410 = vmatprep.subr.bf16.mxu0 %v444_v18 }
   0xa   :  { %v77_v33 = vsel %vm70_vm2, %v73_v29, %v76_v26 }
   0xb   :  { %v86_v32 = vsel %vm70_vm2, %v76_v26, %v85_v30 }
   0xc   :  { %53 = vrot.lane.b32.xlu0 %v49_v28, %s473_s30  ;;  %411 = vmatpush3.bf16.msra.mxu0 %v444_v18 }
   0xd   :  { %89 = vrot.lane.b32.xlu1 %v86_v32, %s474_s8 }
   0xe   :  { %10 = vsyncpa [#allocation3], 0  ;;  %412 = vmatprep.subr.bf16.mxu0 %v445_v31  ;;  %v446_v34 = vld [vmem:[%s575_s1 + $0x18] sm:$0xff]   ;;  %v447_v35 = vld [vmem:[%s575_s1 + $0x10] sm:$0xff]   ;;  %vm91_vm3 = vcmask 261120   ;;  %vm96_vm4 = vcmask 523264  }
   0xf   :  { %v448_v36 = vld [vmem:[%s575_s1 + $0x8] sm:$0xff]   ;;  %v449_v37 = vld [vmem:[%s575_s1] sm:$0xff]   ;;  %vm101_vm5 = vcmask 785408   ;;  %v475_v51 = vmov 0.0   ;;  %vm476_vm6 = vmmov 0   ;;  %vm244_vm7 = vcmask 64513  }
  0x10   :  { %87 = vrot.lane.b32.xlu0 %v77_v33, %s474_s8  ;;  %413 = vmatpush3.bf16.msra.mxu0 %v445_v31  ;;  %v282_v50 = vld [vmem:[%s577_s3 + $0x8] sm:$0xff]  ;;  %v281_v52 = vld [vmem:[%s577_s3] sm:$0xff]  ;;  %vm255_vm8 = vcmask 130113   ;;  %vm246_vm9 = vcmask 63488   ;;  %vm257_vm10 = vcmask 128064   ;;  %vm221_vm11 = vcmask 64512  }
  0x11   :  { %414 = vmatprep.subr.bf16.mxu0 %v446_v34  ;;  %426 = vmatprep.subr.mxu1 %v475_v51  ;;  %vm232_vm12 = vcmask 130112   ;;  %vm223_vm13 = vcmask 62464   ;;  %vm234_vm14 = vcmask 127040   ;;  %vm270_vm15 = vcmask 1040384   ;;  %v390_v31 = vld [vmem:[%s576_s2] ss:$0 sm:$0xff] }
  0x12   :  { %430 = vmatprep.mubr.msk.f32.mxu1 %vm476_vm6, %v475_v51  ;;  %427 = vmatpush3.msra.mxu1 %v282_v50  ;;  %vm290_vm0 = vcmask 130048   ;;  %s477_s23 = smov [#allocation2]  }
  0x13   :  { %428 = vmatprep.subr.mxu1 %v475_v51  ;;  %s371_s24 = sshll.u32 %s477_s23, 4  ;;  %s372_s24 = int_to_ptr.vmem [resolvable:$true] %s371_s24 }
  0x14   :  { %415 = vmatpush3.bf16.msra.mxu0 %v446_v34  ;;  %429 = vmatpush3.msra.mxu1 %v281_v52  ;;  %s450_s25 = scalar_lea.vmem %s372_s24, 32  ;;  %p455_p1 = scmp.lt.s32.totalorder %s372_s24, %s372_s24 }
  0x15   :  { %416 = vmatprep.subr.bf16.mxu0 %v447_v35  ;;  %p451_p0 = scmp.ne.s32.totalorder %s372_s24, %s450_s25  ;;  %p456_p2 = scmp.lt.s32.totalorder %s450_s25, %s450_s25 }
  0x17   :  { %p457_p3 = por %p456_p2, %p455_p1 }
  0x18   :  { %417 = vmatpush3.bf16.msra.mxu0 %v447_v35 }
  0x19   :  { %418 = vmatprep.subr.bf16.mxu0 %v448_v36  ;;  %p458_p4 = pnand %p457_p3, %p451_p0 }
  0x1c   :  { %419 = vmatpush3.bf16.msra.mxu0 %v448_v36  ;;  %v391_v36 = vld [vmem:[%s578_s4] ss:$0 sm:$0xff] }
  0x1d   :  { %420 = vmatprep.subr.bf16.mxu0 %v449_v37 }
  0x20   :  { %421 = vmatpush3.bf16.msra.mxu0 %v449_v37 }
  0x77   :  { %v67_v38 = vpop.permute.xlu1 %66 }
  0x7a   :  { %v56_v39 = vpop.permute.xlu0 %55 }
  0x7b   :  { %v69_v40 = vpop.permute.xlu1 %68  ;;  %v95_v43 = vsel %vm91_vm3, %v516_v1, %v56_v39 }
  0x7c   :  { %v100_v47 = vsel %vm96_vm4, %v95_v43, %v69_v40 }
  0x7e   :  { %v54_v41 = vpop.permute.xlu0 %53 }
  0x7f   :  { %v93_v42 = vsel %vm91_vm3, %v511_v0, %v54_v41  ;;  %v90_v44 = vpop.permute.xlu1 %89 }
  0x80   :  { %v98_v46 = vsel %vm96_vm4, %v93_v42, %v67_v38  ;;  %v106_v49 = vsel %vm101_vm5, %v100_v47, %v90_v44 }
  0x82   :  { %v88_v45 = vpop.permute.xlu0 %87 }
  0x83   :  { %v103_v48 = vsel %vm101_vm5, %v98_v46, %v88_v45 }
  0x84   :  { %422 = vmatprep.mubr.bf16.mxu0 %v103_v48 }
  0x85   :  { %423 = vmatmul.mubr.bf16.vlgmr.msra.gmra.mxu0 %v106_v49 }
 0x145   :  { %v424_v53 = vpop.f32.mrf.mxu0 }
 0x146   :  { %v245_v56 = vsel %vm244_vm7, %v424_v53, -inf  ;;  %v256_v57 = vsel %vm255_vm8, %v424_v53, -inf }
 0x147   :  { %v206_v54 = vpop.f32.mrf.mxu0 }
 0x148   :  { %v222_v63 = vsel %vm221_vm11, %v206_v54, -inf  ;;  %v233_v0 = vsel %vm232_vm12, %v206_v54, -inf }
 0x149   :  { %v425_v55 = vpop.f32.mrf.mxu0 }
 0x14a   :  { %v247_v58 = vsel %vm246_vm9, %v425_v55, -inf  ;;  %v258_v59 = vsel %vm257_vm10, %v425_v55, -inf }
 0x14b   :  { %v248_v60 = vmax.f32 %v245_v56, %v247_v58  ;;  %v259_v61 = vmax.f32 %v256_v57, %v258_v59  ;;  %v209_v62 = vpop.f32.mrf.mxu0 }
 0x14c   :  { %v224_v1 = vsel %vm223_vm13, %v209_v62, -inf  ;;  %v235_v2 = vsel %vm234_vm14, %v209_v62, -inf }
 0x14d   :  { %v249_v3 = vrot.slane %v248_v60, 4  ;;  %v260_v4 = vrot.slane %v259_v61, 4  ;;  %v225_v5 = vmax.f32 %v222_v63, %v224_v1  ;;  %v236_v6 = vmax.f32 %v233_v0, %v235_v2 }
 0x14f   :  { %v250_v7 = vmax.f32 %v248_v60, %v249_v3  ;;  %v261_v8 = vmax.f32 %v259_v61, %v260_v4  ;;  %v226_v9 = vrot.slane %v225_v5, 4  ;;  %v237_v10 = vrot.slane %v236_v6, 4 }
 0x151   :  { %v251_v11 = vrot.slane %v250_v7, 2  ;;  %v262_v12 = vrot.slane %v261_v8, 2  ;;  %v227_v13 = vmax.f32 %v225_v5, %v226_v9  ;;  %v238_v14 = vmax.f32 %v236_v6, %v237_v10 }
 0x153   :  { %v252_v15 = vmax.f32 %v250_v7, %v251_v11  ;;  %v263_v16 = vmax.f32 %v261_v8, %v262_v12  ;;  %v228_v17 = vrot.slane %v227_v13, 2  ;;  %v239_v18 = vrot.slane %v238_v14, 2 }
 0x155   :  { %v253_v19 = vrot.slane %v252_v15, 1  ;;  %v264_v20 = vrot.slane %v263_v16, 1  ;;  %v229_v21 = vmax.f32 %v227_v13, %v228_v17  ;;  %v240_v22 = vmax.f32 %v238_v14, %v239_v18 }
 0x157   :  { %v254_v23 = vmax.f32 %v252_v15, %v253_v19  ;;  %v265_v24 = vmax.f32 %v263_v16, %v264_v20  ;;  %v230_v25 = vrot.slane %v229_v21, 1  ;;  %v241_v26 = vrot.slane %v240_v22, 1 }
 0x159   :  { %v266_v27 = vsel %vm221_vm11, %v254_v23, %v265_v24  ;;  %v231_v28 = vmax.f32 %v229_v21, %v230_v25  ;;  %v242_v29 = vmax.f32 %v240_v22, %v241_v26 }
 0x15a   :  { %v268_v30 = vrot.slane %v266_v27, 7 }
 0x15b   :  { %v243_v32 = vsel %vm221_vm11, %v231_v28, %v242_v29 }
 0x15c   :  { %v271_v33 = vsel %vm270_vm15, %v243_v32, %v268_v30 }
 0x15d   :  { %v279_v34 = vadd.f32 %v390_v31, %v271_v33 }
 0x15f   :  { %v280_v35 = vmax.f32 %v279_v34, 0.0 }
 0x161   :  { %431 = vmatmul.mubr.msk.f32.vlgmr.msra.gmra.mxu1 %vm290_vm0, %v280_v35 }
 0x221   :  { %v360_v37 = vpop.f32.mrf.mxu1 }
 0x222   :  { %v361_v38 = vadd.f32 %v391_v36, %v360_v37 }
 0x223   :  { %v432_v39 = vpop.f32.mrf.mxu1 }
 0x224   :  { %364 = vst [vmem:[#allocation2] sm:$0x3] %v361_v38 }
 0x225   :  { %461 = shalt.err (!%p458_p4)
}
 0x226   :  { %374 = dma.vmem_to_hbm [thread:$0]  %s372_s24, 32, %s579_s5, [#allocation3]  }
 0x227   :  { %470 = dma.done.wait [#allocation3], 32  }
 0x228   :  { %471 = vsyncadd [#allocation3], 4294967264 }
 0x229   :  { %378 = vsyncpa [#allocation3], 1 }

</bundles_post_ra>
